<compile_context>
chip_gen: v6e
topology: v6e:2x2x1
jax: 0.10.0
libtpu: 0.0.40
codegen_flags: <defaults>
</compile_context>

<pallas_src>
import functools

import jax
import jax.numpy as jnp
from jax import lax
from jax.experimental import pallas as pl
from jax.experimental.pallas import tpu as pltpu


# ---------------------------------------------------------------------------
# Pallas kernel: whole residual block for one image
# ---------------------------------------------------------------------------
def _res_block_kernel(x_ref, m1_ref, m2_ref, *rest, ksize, ho, stride, pad,
                      identity):
    # x_ref  : (H + 2*pad, W*Cin)        f32   (row halo only)
    # m1_ref : (K, W*Cin,  Wo*Cout)      bf16  (conv1 row matrices)
    # m2_ref : (K, Wo*Cout, Wo*Cout)     bf16  (conv2 row matrices)
    # msc_ref: (W*Cin, Wo*Cout)          bf16  (1x1 shortcut, only if not identity)
    # o_ref  : (Ho, Wo*Cout)             f32
    # hid_ref: (Ho + 2*pad, Wo*Cout)     f32   VMEM scratch (row-halo for conv2)
    if identity:
        o_ref, hid_ref = rest
        msc_ref = None
    else:
        msc_ref, o_ref, hid_ref = rest

    def rows(start):
        # `ho` output rows starting at `start` (strided for conv1 / shortcut)
        return pl.ds(start, ho) if stride == 1 else pl.ds(start, ho, stride)

    # ---- conv1 (KxK, stride) + ReLU : K row-shifted bf16 matmuls, f32 acc ----
    acc = jnp.dot(x_ref[rows(0)].astype(jnp.bfloat16), m1_ref[0],
                  preferred_element_type=jnp.float32)
    for kh in range(1, ksize):
        acc += jnp.dot(x_ref[rows(kh)].astype(jnp.bfloat16), m1_ref[kh],
                       preferred_element_type=jnp.float32)
    hid = jnp.maximum(acc, 0.0)

    # ---- stage hid with a zero row halo (column halo folded into m2) ----
    hid_ref[...] = jnp.zeros_like(hid_ref)
    hid_ref[pl.ds(pad, ho), :] = hid

    # ---- conv2 (KxK, stride 1) ----
    acc = jnp.dot(hid_ref[pl.ds(0, ho)].astype(jnp.bfloat16), m2_ref[0],
                  preferred_element_type=jnp.float32)
    for kh in range(1, ksize):
        acc += jnp.dot(hid_ref[pl.ds(kh, ho)].astype(jnp.bfloat16), m2_ref[kh],
                       preferred_element_type=jnp.float32)

    # ---- shortcut + residual add + ReLU (f32 on the VPU) ----
    if identity:
        acc += x_ref[pl.ds(pad, ho)]
    else:
        acc += jnp.dot(x_ref[rows(pad)].astype(jnp.bfloat16), msc_ref[...],
                       preferred_element_type=jnp.float32)

    o_ref[...] = jnp.maximum(acc, 0.0).astype(o_ref.dtype)


# ---------------------------------------------------------------------------
# Weight preprocessing: per-row-tap block-Toeplitz matrices
# ---------------------------------------------------------------------------
def _build_row_matrices(w_oihw, w_out, w_in, stride, col_offset):
    """M[kh, p*cin + ci, w*cout + co] = w[co, ci, kh, kw]  with p = w*stride + kw + col_offset.
    Taps whose p falls outside [0, w_in) are dropped (== zero column padding)."""
    cout, cin, kh_, kw_ = w_oihw.shape
    wt = jnp.transpose(w_oihw, (2, 3, 1, 0)).astype(jnp.float32)     # (Kh, Kw, cin, cout)
    p = jnp.arange(w_in)[:, None, None]
    w = jnp.arange(w_out)[None, :, None]
    kw = jnp.arange(kw_)[None, None, :]
    sel = (p == w * stride + kw + col_offset).astype(jnp.float32)    # (w_in, w_out, Kw)
    m = jnp.einsum("pwk,hkio->hpiwo", sel, wt)                       # (Kh, w_in, cin, w_out, cout)
    return m.reshape(kh_, w_in * cin, w_out * cout)


# ---------------------------------------------------------------------------
# Forward wrapper
# ---------------------------------------------------------------------------
@functools.partial(jax.jit, static_argnames=("kernel_size", "padding", "stride"))
def residual_block_forward(x_nchw, w1, w2, ws, *, kernel_size, padding, stride):
    n, cin, hh, ww = x_nchw.shape
    cout = w1.shape[0]
    k, pad = kernel_size, padding
    assert 2 * pad == k - 1, "residual add needs 'same'-style padding (2*pad == k-1)"

    ho = (hh + 2 * pad - k) // stride + 1
    wo = (ww + 2 * pad - k) // stride + 1
    identity = (stride == 1) and (cin == cout)

    # NCHW -> lane-dense (N, H + 2*pad, W*Cin) slab with a ROW halo only.
    x_nhwc = jnp.transpose(x_nchw, (0, 2, 3, 1)).astype(jnp.float32)
    x2d = jnp.pad(x_nhwc, ((0, 0), (pad, pad), (0, 0), (0, 0))).reshape(
        n, hh + 2 * pad, ww * cin)

    # bf16 MXU operands (accumulation stays f32 inside the kernel).
    m1 = _build_row_matrices(w1, wo, ww, stride, -pad).astype(jnp.bfloat16)
    m2 = _build_row_matrices(w2, wo, wo, 1, -pad).astype(jnp.bfloat16)

    in_specs = [
        pl.BlockSpec((None, hh + 2 * pad, ww * cin), lambda i: (i, 0, 0)),
        pl.BlockSpec((k, ww * cin, wo * cout), lambda i: (0, 0, 0)),
        pl.BlockSpec((k, wo * cout, wo * cout), lambda i: (0, 0, 0)),
    ]
    args = [x2d, m1, m2]
    if not identity:
        msc = _build_row_matrices(ws, wo, ww, stride, 0).astype(jnp.bfloat16)[0]
        in_specs.append(pl.BlockSpec((ww * cin, wo * cout), lambda i: (0, 0)))
        args.append(msc)

    kernel = functools.partial(_res_block_kernel, ksize=k, ho=ho, stride=stride,
                               pad=pad, identity=identity)

    out2d = pl.pallas_call(
        kernel,
        out_shape=jax.ShapeDtypeStruct((n, ho, wo * cout), jnp.float32),
        grid=(n,),
        in_specs=in_specs,
        out_specs=pl.BlockSpec((None, ho, wo * cout), lambda i: (i, 0, 0)),
        scratch_shapes=[pltpu.VMEM((ho + 2 * pad, wo * cout), jnp.float32)],
        compiler_params=pltpu.CompilerParams(dimension_semantics=("parallel",)),
    )(*args)

    # (N, Ho, Wo*Cout) -> (N, Ho, Wo, Cout) -> NCHW   (free reshape + transpose)
    return jnp.transpose(out2d.reshape(n, ho, wo, cout), (0, 3, 1, 2))


# ---------------------------------------------------------------------------
# Pure-JAX reference (matches the PyTorch module)
# ---------------------------------------------------------------------------
def reference_forward(x, w1, w2, ws, *, kernel_size, padding, stride):
    dn = ("NCHW", "OIHW", "NCHW")
    out = lax.conv_general_dilated(
        x, w1, (stride, stride), [(padding, padding)] * 2, dimension_numbers=dn)
    out = jnp.maximum(out, 0.0)
    out = lax.conv_general_dilated(
        out, w2, (1, 1), [(padding, padding)] * 2, dimension_numbers=dn)
    cin, cout = x.shape[1], w1.shape[0]
    if stride != 1 or cin != cout:
        sc = lax.conv_general_dilated(
            x, ws, (stride, stride), [(0, 0), (0, 0)], dimension_numbers=dn)
    else:
        sc = x
    return jnp.maximum(out + sc, 0.0)


# ---------------------------------------------------------------------------
if __name__ == "__main__":
    # ResidualBlock(inchannel=4, outchannel=8, kernel_size=3, padding=1, stride=1)
    N, CIN, H, W = 2, 4, 16, 16
    COUT, K, PAD, STRIDE = 8, 3, 1, 1

    key = jax.random.PRNGKey(0)
    kx, k1, k2, k3 = jax.random.split(key, 4)
    x = jax.random.normal(kx, (N, CIN, H, W), dtype=jnp.float32)
    w1 = 0.1 * jax.random.normal(k1, (COUT, CIN, K, K), dtype=jnp.float32)
    w2 = 0.1 * jax.random.normal(k2, (COUT, COUT, K, K), dtype=jnp.float32)
    ws = 0.1 * jax.random.normal(k3, (COUT, CIN, 1, 1), dtype=jnp.float32)

    out = residual_block_forward(
        x, w1, w2, ws, kernel_size=K, padding=PAD, stride=STRIDE)
    out = jax.block_until_ready(out)

    ref = reference_forward(x, w1, w2, ws, kernel_size=K, padding=PAD, stride=STRIDE)
    assert out.shape == (N, COUT, H, W), out.shape
    max_err = float(jnp.max(jnp.abs(out - ref)))
    assert jnp.allclose(out, ref, atol=3e-2, rtol=3e-2), max_err
    print("KERNEL_OK")
</pallas_src>

<mosaic_0001>
module attributes {stable_mosaic.version = 11 : i64} {
  func.func @_res_block_kernel(%arg0: i32, %arg1: memref<1x18x64xf32, #tpu.memory_space<vmem>>, %arg2: memref<3x64x128xbf16, #tpu.memory_space<vmem>>, %arg3: memref<3x128x128xbf16, #tpu.memory_space<vmem>>, %arg4: memref<64x128xbf16, #tpu.memory_space<vmem>>, %arg5: memref<1x16x128xf32, #tpu.memory_space<vmem>>, %arg6: memref<18x128xf32, #tpu.memory_space<vmem>>) attributes {dimension_semantics = [#tpu.dimension_semantics<parallel>], iteration_bounds = array<i64: 2>, scalar_prefetch = 0 : i64, scratch_operands = 1 : i64, tpu.core_type = #tpu.core_type<tc>, window_params = [{transform_indices = @transform_0, window_bounds = array<i64: 1, 18, 64>}, {pipeline_mode = #tpu.pipeline_mode<synchronous>, transform_indices = @transform_1, window_bounds = array<i64: 3, 64, 128>}, {pipeline_mode = #tpu.pipeline_mode<synchronous>, transform_indices = @transform_2, window_bounds = array<i64: 3, 128, 128>}, {pipeline_mode = #tpu.pipeline_mode<synchronous>, transform_indices = @transform_3, window_bounds = array<i64: 64, 128>}, {transform_indices = @transform_4, window_bounds = array<i64: 1, 16, 128>}]} {
    %c0 = arith.constant 0 : index
    %c0_0 = arith.constant 0 : index
    %c0_1 = arith.constant 0 : index
    %0 = vector.load %arg1[%c0, %c0_0, %c0_1] : memref<1x18x64xf32, #tpu.memory_space<vmem>>, vector<1x16x64xf32>
    %1 = vector.shape_cast %0 : vector<1x16x64xf32> to vector<16x64xf32>
    %2 = arith.truncf %1 : vector<16x64xf32> to vector<16x64xbf16>
    %c0_2 = arith.constant 0 : index
    %c0_3 = arith.constant 0 : index
    %c0_4 = arith.constant 0 : index
    %3 = vector.load %arg2[%c0_2, %c0_3, %c0_4] : memref<3x64x128xbf16, #tpu.memory_space<vmem>>, vector<1x64x128xbf16>
    %4 = vector.shape_cast %3 : vector<1x64x128xbf16> to vector<64x128xbf16>
    %cst = arith.constant dense<0.000000e+00> : vector<16x128xf32>
    %5 = tpu.matmul %2, %4, %cst {dimension_numbers = #tpu.dot_dimension_numbers<[1], [0], [0], [1], [0, 0, 1, 1], [], []>} : vector<16x64xbf16>, vector<64x128xbf16>, vector<16x128xf32> -> vector<16x128xf32>
    %c0_5 = arith.constant 0 : index
    %c1 = arith.constant 1 : index
    %c0_6 = arith.constant 0 : index
    %6 = vector.load %arg1[%c0_5, %c1, %c0_6] : memref<1x18x64xf32, #tpu.memory_space<vmem>>, vector<1x16x64xf32>
    %7 = vector.shape_cast %6 : vector<1x16x64xf32> to vector<16x64xf32>
    %8 = arith.truncf %7 : vector<16x64xf32> to vector<16x64xbf16>
    %c1_7 = arith.constant 1 : index
    %c0_8 = arith.constant 0 : index
    %c0_9 = arith.constant 0 : index
    %9 = vector.load %arg2[%c1_7, %c0_8, %c0_9] : memref<3x64x128xbf16, #tpu.memory_space<vmem>>, vector<1x64x128xbf16>
    %10 = vector.shape_cast %9 : vector<1x64x128xbf16> to vector<64x128xbf16>
    %cst_10 = arith.constant dense<0.000000e+00> : vector<16x128xf32>
    %11 = tpu.matmul %8, %10, %cst_10 {dimension_numbers = #tpu.dot_dimension_numbers<[1], [0], [0], [1], [0, 0, 1, 1], [], []>} : vector<16x64xbf16>, vector<64x128xbf16>, vector<16x128xf32> -> vector<16x128xf32>
    %12 = arith.addf %5, %11 : vector<16x128xf32>
    %c0_11 = arith.constant 0 : index
    %c2 = arith.constant 2 : index
    %c0_12 = arith.constant 0 : index
    %13 = vector.load %arg1[%c0_11, %c2, %c0_12] : memref<1x18x64xf32, #tpu.memory_space<vmem>>, vector<1x16x64xf32>
    %14 = vector.shape_cast %13 : vector<1x16x64xf32> to vector<16x64xf32>
    %15 = arith.truncf %14 : vector<16x64xf32> to vector<16x64xbf16>
    %c2_13 = arith.constant 2 : index
    %c0_14 = arith.constant 0 : index
    %c0_15 = arith.constant 0 : index
    %16 = vector.load %arg2[%c2_13, %c0_14, %c0_15] : memref<3x64x128xbf16, #tpu.memory_space<vmem>>, vector<1x64x128xbf16>
    %17 = vector.shape_cast %16 : vector<1x64x128xbf16> to vector<64x128xbf16>
    %cst_16 = arith.constant dense<0.000000e+00> : vector<16x128xf32>
    %18 = tpu.matmul %15, %17, %cst_16 {dimension_numbers = #tpu.dot_dimension_numbers<[1], [0], [0], [1], [0, 0, 1, 1], [], []>} : vector<16x64xbf16>, vector<64x128xbf16>, vector<16x128xf32> -> vector<16x128xf32>
    %19 = arith.addf %12, %18 : vector<16x128xf32>
    %cst_17 = arith.constant 0.000000e+00 : f32
    %20 = vector.broadcast %cst_17 : f32 to vector<16x128xf32>
    %21 = arith.maximumf %19, %20 : vector<16x128xf32>
    %cst_18 = arith.constant 0.000000e+00 : f32
    %22 = vector.broadcast %cst_18 : f32 to vector<18x128xf32>
    %c0_19 = arith.constant 0 : index
    %c0_20 = arith.constant 0 : index
    %23 = vector.load %arg6[%c0_19, %c0_20] : memref<18x128xf32, #tpu.memory_space<vmem>>, vector<18x128xf32>
    tpu.vector_store %arg6[%c0_19, %c0_20], %22 {strides = array<i32>} : memref<18x128xf32, #tpu.memory_space<vmem>>, vector<18x128xf32>,
    %c1_21 = arith.constant 1 : index
    %c0_22 = arith.constant 0 : index
    %24 = vector.load %arg6[%c1_21, %c0_22] : memref<18x128xf32, #tpu.memory_space<vmem>>, vector<16x128xf32>
    tpu.vector_store %arg6[%c1_21, %c0_22], %21 {strides = array<i32>} : memref<18x128xf32, #tpu.memory_space<vmem>>, vector<16x128xf32>,
    %c0_23 = arith.constant 0 : index
    %c0_24 = arith.constant 0 : index
    %25 = vector.load %arg6[%c0_23, %c0_24] : memref<18x128xf32, #tpu.memory_space<vmem>>, vector<16x128xf32>
    %26 = arith.truncf %25 : vector<16x128xf32> to vector<16x128xbf16>
    %c0_25 = arith.constant 0 : index
    %c0_26 = arith.constant 0 : index
    %c0_27 = arith.constant 0 : index
    %27 = vector.load %arg3[%c0_25, %c0_26, %c0_27] : memref<3x128x128xbf16, #tpu.memory_space<vmem>>, vector<1x128x128xbf16>
    %28 = vector.shape_cast %27 : vector<1x128x128xbf16> to vector<128x128xbf16>
    %cst_28 = arith.constant dense<0.000000e+00> : vector<16x128xf32>
    %29 = tpu.matmul %26, %28, %cst_28 {dimension_numbers = #tpu.dot_dimension_numbers<[1], [0], [0], [1], [0, 0, 1, 1], [], []>} : vector<16x128xbf16>, vector<128x128xbf16>, vector<16x128xf32> -> vector<16x128xf32>
    %c1_29 = arith.constant 1 : index
    %c0_30 = arith.constant 0 : index
    %30 = vector.load %arg6[%c1_29, %c0_30] : memref<18x128xf32, #tpu.memory_space<vmem>>, vector<16x128xf32>
    %31 = arith.truncf %30 : vector<16x128xf32> to vector<16x128xbf16>
    %c1_31 = arith.constant 1 : index
    %c0_32 = arith.constant 0 : index
    %c0_33 = arith.constant 0 : index
    %32 = vector.load %arg3[%c1_31, %c0_32, %c0_33] : memref<3x128x128xbf16, #tpu.memory_space<vmem>>, vector<1x128x128xbf16>
    %33 = vector.shape_cast %32 : vector<1x128x128xbf16> to vector<128x128xbf16>
    %cst_34 = arith.constant dense<0.000000e+00> : vector<16x128xf32>
    %34 = tpu.matmul %31, %33, %cst_34 {dimension_numbers = #tpu.dot_dimension_numbers<[1], [0], [0], [1], [0, 0, 1, 1], [], []>} : vector<16x128xbf16>, vector<128x128xbf16>, vector<16x128xf32> -> vector<16x128xf32>
    %35 = arith.addf %29, %34 : vector<16x128xf32>
    %c2_35 = arith.constant 2 : index
    %c0_36 = arith.constant 0 : index
    %36 = vector.load %arg6[%c2_35, %c0_36] : memref<18x128xf32, #tpu.memory_space<vmem>>, vector<16x128xf32>
    %37 = arith.truncf %36 : vector<16x128xf32> to vector<16x128xbf16>
    %c2_37 = arith.constant 2 : index
    %c0_38 = arith.constant 0 : index
    %c0_39 = arith.constant 0 : index
    %38 = vector.load %arg3[%c2_37, %c0_38, %c0_39] : memref<3x128x128xbf16, #tpu.memory_space<vmem>>, vector<1x128x128xbf16>
    %39 = vector.shape_cast %38 : vector<1x128x128xbf16> to vector<128x128xbf16>
    %cst_40 = arith.constant dense<0.000000e+00> : vector<16x128xf32>
    %40 = tpu.matmul %37, %39, %cst_40 {dimension_numbers = #tpu.dot_dimension_numbers<[1], [0], [0], [1], [0, 0, 1, 1], [], []>} : vector<16x128xbf16>, vector<128x128xbf16>, vector<16x128xf32> -> vector<16x128xf32>
    %41 = arith.addf %35, %40 : vector<16x128xf32>
    %c0_41 = arith.constant 0 : index
    %c1_42 = arith.constant 1 : index
    %c0_43 = arith.constant 0 : index
    %42 = vector.load %arg1[%c0_41, %c1_42, %c0_43] : memref<1x18x64xf32, #tpu.memory_space<vmem>>, vector<1x16x64xf32>
    %43 = vector.shape_cast %42 : vector<1x16x64xf32> to vector<16x64xf32>
    %44 = arith.truncf %43 : vector<16x64xf32> to vector<16x64xbf16>
    %c0_44 = arith.constant 0 : index
    %c0_45 = arith.constant 0 : index
    %45 = vector.load %arg4[%c0_44, %c0_45] : memref<64x128xbf16, #tpu.memory_space<vmem>>, vector<64x128xbf16>
    %cst_46 = arith.constant dense<0.000000e+00> : vector<16x128xf32>
    %46 = tpu.matmul %44, %45, %cst_46 {dimension_numbers = #tpu.dot_dimension_numbers<[1], [0], [0], [1], [0, 0, 1, 1], [], []>} : vector<16x64xbf16>, vector<64x128xbf16>, vector<16x128xf32> -> vector<16x128xf32>
    %47 = arith.addf %41, %46 : vector<16x128xf32>
    %cst_47 = arith.constant 0.000000e+00 : f32
    %48 = vector.broadcast %cst_47 : f32 to vector<16x128xf32>
    %49 = arith.maximumf %47, %48 : vector<16x128xf32>
    %c0_48 = arith.constant 0 : index
    %c0_49 = arith.constant 0 : index
    %c0_50 = arith.constant 0 : index
    %50 = vector.load %arg5[%c0_48, %c0_49, %c0_50] : memref<1x16x128xf32, #tpu.memory_space<vmem>>, vector<1x16x128xf32>
    %51 = vector.shape_cast %50 : vector<1x16x128xf32> to vector<16x128xf32>
    %52 = vector.shape_cast %49 : vector<16x128xf32> to vector<1x16x128xf32>
    tpu.vector_store %arg5[%c0_48, %c0_49, %c0_50], %52 {strides = array<i32>} : memref<1x16x128xf32, #tpu.memory_space<vmem>>, vector<1x16x128xf32>,
    return
  }
  func.func @transform_0(%arg0: i32) -> (i32, i32, i32) {
    %c0_i32 = arith.constant 0 : i32
    %c0_i32_0 = arith.constant 0 : i32
    %c0_i32_1 = arith.constant 0 : i32
    return %arg0, %c0_i32, %c0_i32_0 : i32, i32, i32
  }
  func.func @transform_1(%arg0: i32) -> (i32, i32, i32) {
    %c0_i32 = arith.constant 0 : i32
    %c0_i32_0 = arith.constant 0 : i32
    %c0_i32_1 = arith.constant 0 : i32
    %c0_i32_2 = arith.constant 0 : i32
    return %c0_i32, %c0_i32_0, %c0_i32_1 : i32, i32, i32
  }
  func.func @transform_2(%arg0: i32) -> (i32, i32, i32) {
    %c0_i32 = arith.constant 0 : i32
    %c0_i32_0 = arith.constant 0 : i32
    %c0_i32_1 = arith.constant 0 : i32
    %c0_i32_2 = arith.constant 0 : i32
    return %c0_i32, %c0_i32_0, %c0_i32_1 : i32, i32, i32
  }
  func.func @transform_3(%arg0: i32) -> (i32, i32) {
    %c0_i32 = arith.constant 0 : i32
    %c0_i32_0 = arith.constant 0 : i32
    %c0_i32_1 = arith.constant 0 : i32
    return %c0_i32, %c0_i32_0 : i32, i32
  }
  func.func @transform_4(%arg0: i32) -> (i32, i32, i32) {
    %c0_i32 = arith.constant 0 : i32
    %c0_i32_0 = arith.constant 0 : i32
    %c0_i32_1 = arith.constant 0 : i32
    return %arg0, %c0_i32, %c0_i32_0 : i32, i32, i32
  }
}

</mosaic_0001>

<bundles_post_ra>
// kernel: residual_block_forward.1
= control target key start
LH: loop header
LB: loop body
LE: loop exit
PB: predicated region body
PF: predicated region fallthrough
CT: control target
= control target key end

     0   :  { %s1260_s15 = smov 0   ;;  %s1466_s0 = inlined_call_operand.vmem [shape: f32[2,18,64], index: 0, kind: input, shape index: {}]   ;;  %s1467_s1 = inlined_call_operand.vmem [shape: bf16[3,64,128], index: 1, kind: input, shape index: {}]   ;;  %s1468_s2 = inlined_call_operand.vmem [shape: bf16[3,128,128], index: 2, kind: input, shape index: {}]   ;;  %s1469_s3 = inlined_call_operand.vmem [shape: bf16[64,128], index: 3, kind: input, shape index: {}]   ;;  %s1470_s4 = inlined_call_operand.vmem [shape: f32[2,16,128], index: 4, kind: output, shape index: {}]  }
   0x1 LB: > { %s916_s16 = sadd.s32 4294967295, %s1231_s15   ;;  %p920_p0 = scmp.ge.s32.totalorder %s1231_s15, 1  ;;  %s1231_s15 = sphi %s1260_s15, %s14_s15  }
   0x2   : > { %p162_p1 = scmp.lt.s32.totalorder %s1231_s15, 3 }
   0x4   : > { %p163_p2 = pnand %p920_p0, %p162_p1 }
   0x5   : > { %p188_p3 = scmp.lt.s32.totalorder (!%p163_p2), %s916_s16, 1 }
   0x6   : > { %166 = sbr.rel (%p163_p2) target bundleno = 483 (0x1e3), region = 36 }
   0xb   : > { %v1185_v0 = vld [vmem:[%s1467_s1 + $0x38] sm:$0xff]   ;;  %v1233_v1 = vmov 0.0   ;;  %v1187_v3 = vld [vmem:[%s1467_s1 + $0x30] sm:$0xff]   ;;  %vm1234_vm0 = vmmov 0   ;;  %s1472_s16 = smov (!%p188_p3, %s916_s16), 1  ;;  %v1189_v5 = vld [vmem:[%s1467_s1 + $0x28] sm:$0xff]  }
   0xc   : > { %1066 = vmatprep.subr.bf16.mxu0 %v1233_v1  ;;  %443 = vst [vmem:[#allocation2] sm:$0xff] %v1233_v1  ;;  %444 = vst [vmem:[#allocation2 + $0x8] sm:$0xff] %v1233_v1  ;;  %1078 = vmatprep.subr.bf16.mxu1 %v1233_v1  ;;  %v1186_v2 = vld [vmem:[%s1467_s1 + $0x18] sm:$0xff]   ;;  %v1188_v4 = vld [vmem:[%s1467_s1 + $0x10] sm:$0xff]   ;;  %s1174_s27 = smul.u32 24, %s1472_s16  ;;  %vm246_vm1 = vcmask 523264  }
   0xd   : > { %445 = vst [vmem:[#allocation2 + $0x10] sm:$0x3] %v1233_v1  ;;  %1067 = vmatpush3.bf16.msra.mxu0 %v1185_v0  ;;  %1074 = vmatprep.mubr.msk.bf16.mxu0 %vm1234_vm0, %v1233_v1  ;;  %v1190_v6 = vld [vmem:[%s1467_s1 + $0x8] sm:$0xff]   ;;  %v1191_v7 = vld [vmem:[%s1467_s1 + $0x20] sm:$0xff]   ;;  %v1193_v14 = vld [vmem:[%s1467_s1 + $0x58] sm:$0xff]   ;;  %s1018_s29 = sshll.u32 %s1472_s16, 4 }
   0xe   : > { %1079 = vmatpush3.bf16.msra.mxu1 %v1186_v2  ;;  %1068 = vmatprep.subr.bf16.mxu0 %v1233_v1  ;;  %s192_s8 = scalar_lea.vmem %s1466_s0, %s1174_s27  ;;  %v1192_v8 = vld [vmem:[%s1467_s1] sm:$0xff]   ;;  %v1194_v16 = vld [vmem:[%s1467_s1 + $0x50] sm:$0xff]   ;;  %v1195_v17 = vld [vmem:[%s1467_s1 + $0x48] sm:$0xff]   ;;  %s197_s6 = scalar_lea.vmem %s1470_s4, %s1018_s29 }
   0xf   : > { %1080 = vmatprep.subr.bf16.mxu1 %v1233_v1  ;;  %1086 = vmatprep.mubr.msk.bf16.mxu1 %vm1234_vm0, %v1233_v1  ;;  %v210_v9 = vld [vmem:[%s192_s8 + $0x1] sm:$0xff]  ;;  %v211_v10 = vld [vmem:[%s192_s8 + $0x9] sm:$0xff]  ;;  %v1197_v22 = vld [vmem:[%s1468_s2 + $0x78] sm:$0xff]  }
  0x10   : > { %v199_v11 = vld [vmem:[%s192_s8] sm:$0xff]  ;;  %v200_v12 = vld [vmem:[%s192_s8 + $0x8] sm:$0xff]  ;;  %v1313_v13 = vpack.c.bf16 %v211_v10, %v210_v9  ;;  %v1199_v23 = vld [vmem:[%s1468_s2 + $0x70] sm:$0xff]  }
  0x11   : > { %1069 = vmatpush3.bf16.msra.mxu0 %v1187_v3  ;;  %v201_v15 = vpack.c.bf16 %v200_v12, %v199_v11  ;;  %v1196_v18 = vld [vmem:[%s1467_s1 + $0x40] sm:$0xff]   ;;  %v360_v20 = vld [vmem:[%s192_s8 + $0xa] sm:$0xff]  ;;  %v1198_v25 = vld [vmem:[%s1468_s2 + $0x38] sm:$0xff]  }
  0x12   : > { %1081 = vmatpush3.bf16.msra.mxu1 %v1188_v4  ;;  %1070 = vmatprep.subr.bf16.mxu0 %v1233_v1  ;;  %v359_v19 = vld [vmem:[%s192_s8 + $0x2] sm:$0xff]  ;;  %v1200_v26 = vld [vmem:[%s1468_s2 + $0x30] sm:$0xff]   ;;  %v1205_v29 = vld [vmem:[%s1468_s2 + $0x58] sm:$0xff]  }
  0x13   : > { %1082 = vmatprep.subr.bf16.mxu1 %v1233_v1  ;;  %v361_v21 = vpack.c.bf16 %v360_v20, %v359_v19  ;;  %v1201_v24 = vld [vmem:[%s1468_s2 + $0x68] sm:$0xff]   ;;  %v1203_v27 = vld [vmem:[%s1468_s2 + $0x60] sm:$0xff]   ;;  %v1207_v30 = vld [vmem:[%s1468_s2 + $0x50] sm:$0xff]  }
  0x14   : > { %v1202_v28 = vld [vmem:[%s1468_s2 + $0x28] sm:$0xff]   ;;  %v1204_v31 = vld [vmem:[%s1468_s2 + $0x20] sm:$0xff]   ;;  %v1206_v33 = vld [vmem:[%s1468_s2 + $0x18] sm:$0xff]  }
  0x15   : > { %1071 = vmatpush3.bf16.msra.mxu0 %v1189_v5  ;;  %v1209_v32 = vld [vmem:[%s1468_s2 + $0x48] sm:$0xff]   ;;  %v1211_v34 = vld [vmem:[%s1468_s2 + $0x40] sm:$0xff]   ;;  %v1208_v35 = vld [vmem:[%s1468_s2 + $0x10] sm:$0xff]  }
  0x16   : > { %1083 = vmatpush3.bf16.msra.mxu1 %v1190_v6  ;;  %1072 = vmatprep.subr.bf16.mxu0 %v1233_v1  ;;  %v1210_v36 = vld [vmem:[%s1468_s2 + $0x8] sm:$0xff]   ;;  %v1212_v37 = vld [vmem:[%s1468_s2] sm:$0xff]   ;;  %v1213_v56 = vld [vmem:[%s1468_s2 + $0xb8] sm:$0xff]  }
  0x17   : > { %1084 = vmatprep.subr.bf16.mxu1 %v1233_v1  ;;  %v1214_v58 = vld [vmem:[%s1468_s2 + $0xb0] sm:$0xff]   ;;  %v1215_v59 = vld [vmem:[%s1468_s2 + $0xa8] sm:$0xff]   ;;  %v1217_v62 = vld [vmem:[%s1469_s3 + $0x18] sm:$0xff]  }
  0x18   : > { %v1216_v0 = vld [vmem:[%s1468_s2 + $0xa0] sm:$0xff]   ;;  %v1219_v2 = vld [vmem:[%s1469_s3 + $0x10] sm:$0xff]   ;;  %v1218_v3 = vld [vmem:[%s1468_s2 + $0x98] sm:$0xff]  }
  0x19   : > { %1073 = vmatpush3.bf16.msra.mxu0 %v1191_v7  ;;  %v1221_v4 = vld [vmem:[%s1469_s3 + $0x8] sm:$0xff]   ;;  %v1220_v5 = vld [vmem:[%s1468_s2 + $0x90] sm:$0xff]   ;;  %v1223_v6 = vld [vmem:[%s1469_s3] sm:$0xff]  }
  0x1a   : > { %1085 = vmatpush3.bf16.msra.mxu1 %v1192_v8  ;;  %1090 = vmatprep.subr.bf16.mxu0 %v1233_v1  ;;  %v1222_v7 = vld [vmem:[%s1468_s2 + $0x88] sm:$0xff]   ;;  %v1224_v8 = vld [vmem:[%s1468_s2 + $0x80] sm:$0xff]  }
  0x1b   : > { %1102 = vmatprep.subr.bf16.mxu1 %v1233_v1 }
  0x1c   : > { %1075 = vmatmul.mubr.msk.bf16.vlgmr.msra.gmra.mxu0 %vm246_vm1, %v1313_v13 }
  0x1d   : > { %1087 = vmatmul.mubr.msk.bf16.vlgmr.msra.gmra.mxu1 %vm246_vm1, %v201_v15  ;;  %1091 = vmatpush3.bf16.msra.mxu0 %v1193_v14 }
  0x1e   : > { %1092 = vmatprep.subr.bf16.mxu0 %v1233_v1  ;;  %1098 = vmatprep.mubr.msk.bf16.mxu0 %vm1234_vm0, %v1233_v1 }
  0x1f   : > { %1118 = vmatprep.mubr.msk.bf16.mxu1 %vm1234_vm0, %v1233_v1  ;;  %1103 = vmatpush3.bf16.msra.mxu1 %v1197_v22 }
  0x20   : > { %1104 = vmatprep.subr.bf16.mxu1 %v1233_v1 }
  0x21   : > { %1093 = vmatpush3.bf16.msra.mxu0 %v1194_v16 }
  0x22   : > { %1094 = vmatprep.subr.bf16.mxu0 %v1233_v1 }
  0x23   : > { %1105 = vmatpush3.bf16.msra.mxu1 %v1199_v23 }
  0x24   : > { %1106 = vmatprep.subr.bf16.mxu1 %v1233_v1 }
  0x25   : > { %1095 = vmatpush3.bf16.msra.mxu0 %v1195_v17 }
  0x26   : > { %1096 = vmatprep.subr.bf16.mxu0 %v1233_v1 }
  0x27   : > { %1107 = vmatpush3.bf16.msra.mxu1 %v1201_v24 }
  0x28   : > { %1108 = vmatprep.subr.bf16.mxu1 %v1233_v1 }
  0x29   : > { %1097 = vmatpush3.bf16.msra.mxu0 %v1196_v18 }
  0x2a   : > { %1122 = vmatprep.subr.bf16.mxu0 %v1233_v1 }
  0x2b   : > { %1109 = vmatpush3.bf16.msra.mxu1 %v1203_v27 }
  0x2c   : > { %1099 = vmatmul.mubr.msk.bf16.vlgmr.msra.gmra.mxu0 %vm246_vm1, %v361_v21  ;;  %1110 = vmatprep.subr.bf16.mxu1 %v1233_v1 }
  0x2d   : > { %1138 = vmatprep.mubr.msk.bf16.mxu0 %vm1234_vm0, %v1233_v1  ;;  %1123 = vmatpush3.bf16.msra.mxu0 %v1198_v25 }
  0x2e   : > { %1124 = vmatprep.subr.bf16.mxu0 %v1233_v1 }
  0x2f   : > { %1111 = vmatpush3.bf16.msra.mxu1 %v1205_v29 }
  0x30   : > { %1112 = vmatprep.subr.bf16.mxu1 %v1233_v1 }
  0x31   : > { %1125 = vmatpush3.bf16.msra.mxu0 %v1200_v26 }
  0x32   : > { %1126 = vmatprep.subr.bf16.mxu0 %v1233_v1 }
  0x33   : > { %1113 = vmatpush3.bf16.msra.mxu1 %v1207_v30 }
  0x34   : > { %1114 = vmatprep.subr.bf16.mxu1 %v1233_v1 }
  0x35   : > { %1127 = vmatpush3.bf16.msra.mxu0 %v1202_v28 }
  0x36   : > { %1128 = vmatprep.subr.bf16.mxu0 %v1233_v1 }
  0x37   : > { %1115 = vmatpush3.bf16.msra.mxu1 %v1209_v32 }
  0x38   : > { %1116 = vmatprep.subr.bf16.mxu1 %v1233_v1 }
  0x39   : > { %1129 = vmatpush3.bf16.msra.mxu0 %v1204_v31 }
  0x3a   : > { %1130 = vmatprep.subr.bf16.mxu0 %v1233_v1 }
  0x3b   : > { %1117 = vmatpush3.bf16.msra.mxu1 %v1211_v34 }
  0x3c   : > { %1142 = vmatprep.subr.bf16.mxu1 %v1233_v1 }
  0x3d   : > { %1131 = vmatpush3.bf16.msra.mxu0 %v1206_v33 }
  0x3e   : > { %1132 = vmatprep.subr.bf16.mxu0 %v1233_v1 }
  0x41   : > { %1133 = vmatpush3.bf16.msra.mxu0 %v1208_v35 }
  0x42   : > { %1134 = vmatprep.subr.bf16.mxu0 %v1233_v1 }
  0x45   : > { %1135 = vmatpush3.bf16.msra.mxu0 %v1210_v36 }
  0x46   : > { %1136 = vmatprep.subr.bf16.mxu0 %v1233_v1 }
  0x49   : > { %1137 = vmatpush3.bf16.msra.mxu0 %v1212_v37 }
  0x4a   : > { %1162 = vmatprep.subr.bf16.mxu0 %v1233_v1 }
  0xdc   : > { %v284_v38 = vpop.f32.mrf.mxu0 }
  0xdd   : > { %v352_v39 = vpop.f32.mrf.mxu1 }
  0xde   : > { %v1076_v40 = vpop.f32.mrf.mxu0  ;;  %v353_v46 = vadd.f32 %v352_v39, %v284_v38 }
  0xdf   : > { %v1088_v41 = vpop.f32.mrf.mxu1 }
  0xe0   : > { %v287_v42 = vpop.f32.mrf.mxu0 }
  0xe1   : > { %v355_v43 = vpop.f32.mrf.mxu1 }
  0xe2   : > { %v1077_v44 = vpop.f32.mrf.mxu0  ;;  %v356_v50 = vadd.f32 %v355_v43, %v287_v42 }
  0xe3   : > { %v1089_v45 = vpop.f32.mrf.mxu1 }
  0xec   : > { %v432_v47 = vpop.f32.mrf.mxu0 }
  0xed   : > { %v439_v48 = vadd.f32 %v432_v47, %v353_v46 }
  0xee   : > { %v1100_v49 = vpop.f32.mrf.mxu0 }
  0xef   : > { %v441_v51 = vmax.f32 %v439_v48, 0.0 }
  0xf0   : > { %v435_v52 = vpop.f32.mrf.mxu0 }
  0xf1   : > { %446 = vst [vmem:[#allocation2 + $0x1] sm:$0xff] %v441_v51  ;;  %v440_v53 = vadd.f32 %v435_v52, %v356_v50 }
  0xf2   : > { %v1101_v54 = vpop.f32.mrf.mxu0 }
  0xf3   : > { %v442_v55 = vmax.f32 %v440_v53, 0.0 }
  0xf5   : > { %447 = vst [vmem:[#allocation2 + $0x9] sm:$0xff] %v442_v55  ;;  %v469_v57 = vpack.c.bf16 %v442_v55, %v441_v51 }
  0xf7   : > { %1119 = vmatmul.mubr.bf16.vlgmr.msra.gmra.mxu1 %v469_v57 }
  0xf8   : > { %1143 = vmatpush3.bf16.msra.mxu1 %v1213_v56  ;;  %1158 = vmatprep.mubr.msk.bf16.mxu1 %vm1234_vm0, %v1233_v1  ;;  %v448_v60 = vld [vmem:[#allocation2] sm:$0xff] }
  0xf9   : > { %1144 = vmatprep.subr.bf16.mxu1 %v1233_v1 }
  0xfc   : > { %v449_v61 = vld [vmem:[#allocation2 + $0x8] sm:$0xff]  ;;  %1145 = vmatpush3.bf16.msra.mxu1 %v1214_v58 }
  0xfd   : > { %v450_v63 = vpack.c.bf16 %v449_v61, %v448_v60  ;;  %1146 = vmatprep.subr.bf16.mxu1 %v1233_v1  ;;  %v665_v9 = vld [vmem:[#allocation2 + $0x2] sm:$0xff]  ;;  %v666_v10 = vld [vmem:[#allocation2 + $0xa] sm:$0xff] }
  0xfe   : > { %v667_v11 = vpack.c.bf16 %v666_v10, %v665_v9 }
  0xff   : > { %1139 = vmatmul.mubr.bf16.vlgmr.msra.gmra.mxu0 %v450_v63 }
 0x100   : > { %1147 = vmatpush3.bf16.msra.mxu1 %v1215_v59  ;;  %1163 = vmatpush3.bf16.msra.mxu0 %v1217_v62 }
 0x101   : > { %1148 = vmatprep.subr.bf16.mxu1 %v1233_v1  ;;  %1164 = vmatprep.subr.bf16.mxu0 %v1233_v1 }
 0x102   : > { %1170 = vmatprep.mubr.msk.bf16.mxu0 %vm1234_vm0, %v1233_v1 }
 0x104   : > { %1149 = vmatpush3.bf16.msra.mxu1 %v1216_v0  ;;  %1165 = vmatpush3.bf16.msra.mxu0 %v1219_v2 }
 0x105   : > { %1150 = vmatprep.subr.bf16.mxu1 %v1233_v1  ;;  %1166 = vmatprep.subr.bf16.mxu0 %v1233_v1 }
 0x108   : > { %1151 = vmatpush3.bf16.msra.mxu1 %v1218_v3  ;;  %1167 = vmatpush3.bf16.msra.mxu0 %v1221_v4 }
 0x109   : > { %1152 = vmatprep.subr.bf16.mxu1 %v1233_v1  ;;  %1168 = vmatprep.subr.bf16.mxu0 %v1233_v1 }
 0x10c   : > { %1153 = vmatpush3.bf16.msra.mxu1 %v1220_v5  ;;  %1169 = vmatpush3.bf16.msra.mxu0 %v1223_v6 }
 0x10d   : > { %1154 = vmatprep.subr.bf16.mxu1 %v1233_v1 }
 0x10f   : > { %1171 = vmatmul.mubr.msk.bf16.vlgmr.msra.gmra.mxu0 %vm246_vm1, %v1313_v13 }
 0x110   : > { %1155 = vmatpush3.bf16.msra.mxu1 %v1222_v7 }
 0x111   : > { %1156 = vmatprep.subr.bf16.mxu1 %v1233_v1 }
 0x114   : > { %1157 = vmatpush3.bf16.msra.mxu1 %v1224_v8 }
 0x117   : > { %1159 = vmatmul.mubr.bf16.vlgmr.msra.gmra.mxu1 %v667_v11 }
 0x1b7   : > { %v569_v12 = vpop.f32.mrf.mxu1 }
 0x1b9   : > { %v1120_v14 = vpop.f32.mrf.mxu1 }
 0x1bb   : > { %v572_v15 = vpop.f32.mrf.mxu1 }
 0x1bd   : > { %v1121_v16 = vpop.f32.mrf.mxu1 }
 0x1bf   : > { %v658_v17 = vpop.f32.mrf.mxu0 }
 0x1c0   : > { %v659_v24 = vadd.f32 %v658_v17, %v569_v12 }
 0x1c1   : > { %v1140_v18 = vpop.f32.mrf.mxu0 }
 0x1c3   : > { %v661_v13 = vpop.f32.mrf.mxu0 }
 0x1c4   : > { %v662_v27 = vadd.f32 %v661_v13, %v572_v15 }
 0x1c5   : > { %v1141_v19 = vpop.f32.mrf.mxu0 }
 0x1cf   : > { %v848_v20 = vpop.f32.mrf.mxu0 }
 0x1d1   : > { %v1172_v21 = vpop.f32.mrf.mxu0 }
 0x1d3   : > { %v851_v22 = vpop.f32.mrf.mxu0 }
 0x1d5   : > { %v1173_v23 = vpop.f32.mrf.mxu0 }
 0x1d7   : > { %v767_v1 = vpop.f32.mrf.mxu1 }
 0x1d8   : > { %v774_v25 = vadd.f32 %v767_v1, %v659_v24 }
 0x1d9   : > { %v1160_v26 = vpop.f32.mrf.mxu1 }
 0x1da   : > { %v855_v28 = vadd.f32 %v848_v20, %v774_v25 }
 0x1db   : > { %v770_v29 = vpop.f32.mrf.mxu1 }
 0x1dc   : > { %v857_v30 = vmax.f32 %v855_v28, 0.0  ;;  %v775_v31 = vadd.f32 %v770_v29, %v662_v27 }
 0x1dd   : > { %v1161_v32 = vpop.f32.mrf.mxu1 }
 0x1de   : > { %859 = vst [vmem:[%s197_s6] sm:$0xff] %v857_v30  ;;  %v856_v33 = vadd.f32 %v851_v22, %v775_v31 }
 0x1e0   : > { %v858_v34 = vmax.f32 %v856_v33, 0.0 }
 0x1e2   : > { %860 = vst [vmem:[%s197_s6 + $0x8] sm:$0xff] %v858_v34 }
 0x1e3 PF: > { %s14_s15 = sadd.s32 1, %s1231_s15  }
 0x1e4   : > { %p11_p4 = scmp.ge.s32.totalorder %s14_s15, 4  }
 0x1e6   :  { %13 = sbr.rel (!%p11_p4) target bundleno = 1 (0x1), region = 70 }

</bundles_post_ra>
